<compile_context>
chip_gen: v5e
topology: v5e:2x2
jax: 0.10.0
libtpu: 0.0.40
codegen_flags: <defaults>
</compile_context>

<pallas_src>
import functools

import jax
import jax.numpy as jnp
from jax import lax
from jax.experimental import pallas as pl
from jax.experimental.pallas import tpu as pltpu


# ----------------------------------------------------------------------------
# Fused Pallas kernel: whole XceptionBlock for NB images, everything in vregs.
# ----------------------------------------------------------------------------

def xception_block_kernel(*refs, NB, H, W, C, U, strides, has_skip, Ho, Wo):
    """Refs (presence of skip/pool refs depends on config):
      x_ref    : (NB, H, W*C)       input images, lane-dense NHWC-flattened
      wu_ref   : (U, 3*W*C, W*C)    per-unit folded dw*pw*BNscale weights (bf16)
      bu_ref   : (U, 1, W*C)        per-unit folded BN bias, tiled over W (f32)
      skw_ref  : (W*C, Wo*C)        [if skip] folded skip 1x1*BNscale + stride sel (bf16)
      skb_ref  : (1, Wo*C)          [if skip] skip BN bias tiled over Wo (f32)
      spool_ref: (W*C, Wo*C)        [if strides!=1] column-subsample selection (f32)
      o_ref    : (NB, Ho, Wo*C)     output, lane-dense
    """
    refs = list(refs)
    x_ref = refs.pop(0)
    wu_ref = refs.pop(0)
    bu_ref = refs.pop(0)
    skw_ref = refs.pop(0) if has_skip else None
    skb_ref = refs.pop(0) if has_skip else None
    spool_ref = refs.pop(0) if strides != 1 else None
    o_ref = refs.pop(0)

    WC = W * C
    x = x_ref[...]                               # (NB, H, WC) f32
    a = x                                        # running activation (values only)

    def row_taps(v):
        # v: (NB, H, WC) -> (NB, H, 3*WC): [v[i-1], v[i], v[i+1]] with zero fill.
        zrow = jnp.zeros((NB, 1, WC), v.dtype)
        dn = jnp.concatenate([zrow, v[:, :H - 1, :]], axis=1)   # row i sees v[i-1]
        up = jnp.concatenate([v[:, 1:, :], zrow], axis=1)       # row i sees v[i+1]
        return jnp.concatenate([dn, v, up], axis=2)

    # --- main branch: U x (ReLU -> sepconv + pointwise + BN) ----------------
    for u in range(U):
        r = jnp.maximum(a, 0.0)                                  # ReLU in f32
        taps = row_taps(r.astype(jnp.bfloat16))                  # (NB, H, 3*WC) bf16
        y = jnp.dot(taps.reshape(NB * H, 3 * WC), wu_ref[u],
                    preferred_element_type=jnp.float32)          # (NB*H, WC) f32
        y = y + bu_ref[u]                                        # folded BN bias
        a = y.reshape(NB, H, WC)

    # --- optional MaxPool(3, strides, pad=1) --------------------------------
    if strides != 1:
        ninf = jnp.float32(-jnp.inf)
        nrow = jnp.full((NB, 1, WC), ninf, jnp.float32)
        dn = jnp.concatenate([nrow, a[:, :H - 1, :]], axis=1)
        up = jnp.concatenate([a[:, 1:, :], nrow], axis=1)
        p = jnp.maximum(a, jnp.maximum(dn, up))                  # vertical 3-max
        # horizontal 3-max: lane rotation by C (XLU) + border mask
        lane = lax.broadcasted_iota(jnp.int32, (NB, H, WC), 2)
        lt = pltpu.roll(p, shift=C, axis=2)                      # value at w-1 (wrapped)
        lt = jnp.where(lane >= C, lt, ninf)
        rt = pltpu.roll(p, shift=WC - C, axis=2)                 # value at w+1 (wrapped)
        rt = jnp.where(lane < WC - C, rt, ninf)
        q = jnp.maximum(p, jnp.maximum(lt, rt))                  # 3x3 max at every center
        q = q.reshape(NB, Ho, strides, WC)[:, :, 0, :]           # row subsample
        y_main = jnp.dot(q.reshape(NB * Ho, WC), spool_ref[...],
                         preferred_element_type=jnp.float32)     # column subsample
    else:
        y_main = a.reshape(NB * Ho, WC)

    # --- residual branch -----------------------------------------------------
    if has_skip:
        if strides != 1:
            xs = x.reshape(NB, Ho, strides, WC)[:, :, 0, :]      # stride rows
        else:
            xs = x
        res = jnp.dot(xs.reshape(NB * Ho, WC).astype(jnp.bfloat16), skw_ref[...],
                      preferred_element_type=jnp.float32) + skb_ref[...]
    else:
        # Guarded wrapper-side: no-skip implies strides == 1.
        res = x.reshape(NB * Ho, WC)

    # single lane-dense full-width store
    o_ref[...] = (y_main + res).reshape(NB, Ho, Wo * C)


# ----------------------------------------------------------------------------
# Wrapper-side parameter folding (BN scale, spatial block-tridiagonal, padding)
# ----------------------------------------------------------------------------

def fold_params(params, in_ch, out_ch, cmax, W, Wo, strides):
    C = cmax
    w_idx = jnp.arange(W)
    offs = jnp.arange(-1, 2)
    # sel[j, wp, w] = 1 iff wp == w + (j - 1)   (dj shift selector)
    sel = (w_idx[None, :, None] ==
           (w_idx[None, None, :] + offs[:, None, None])).astype(jnp.float32)

    units_w, units_b = [], []
    for dw, pw, sc, bi in params["units"]:
        ci, co = pw.shape
        pw_s = pw * sc.reshape(1, co)                               # fold BN scale
        w9 = dw.reshape(9, ci)[:, :, None] * pw_s[None, :, :]       # (9, ci, co)
        w9p = jnp.zeros((9, C, C), jnp.float32).at[:, :ci, :co].set(w9)
        w9u = w9p.reshape(3, 3, C, C)                               # (di, dj, c, o)
        # Wu[di, wp, c, w, o] = w9u[di, wp - w + 1, c, o] for |wp - w| <= 1
        Wu = jnp.einsum("jpw,ijco->ipcwo", sel, w9u)
        units_w.append(Wu.reshape(3 * W * C, W * C))
        bp = jnp.zeros((C,), jnp.float32).at[:co].set(bi.reshape(co))
        units_b.append(jnp.tile(bp, W).reshape(1, W * C))
    wu_all = jnp.stack(units_w).astype(jnp.bfloat16)                # (U, 3WC, WC)
    bu_all = jnp.stack(units_b)                                     # (U, 1, WC)

    # column selection (w == o * strides), reused by skip conv and maxpool
    sel2 = (w_idx[:, None] ==
            (jnp.arange(Wo)[None, :] * strides)).astype(jnp.float32)   # (W, Wo)

    if params["skip"] is not None:
        w, sc, bi = params["skip"]
        w_s = w * sc.reshape(1, out_ch)
        skp = jnp.zeros((C, C), jnp.float32).at[:in_ch, :out_ch].set(w_s)
        skw_big = jnp.einsum("wp,co->wcpo", sel2, skp).reshape(
            W * C, Wo * C).astype(jnp.bfloat16)
        skb_p = jnp.zeros((C,), jnp.float32).at[:out_ch].set(bi.reshape(out_ch))
        skb_big = jnp.tile(skb_p, Wo).reshape(1, Wo * C)
    else:
        skw_big = skb_big = None

    if strides != 1:
        spool = jnp.einsum("wp,cd->wcpd", sel2,
                           jnp.eye(C, dtype=jnp.float32)).reshape(W * C, Wo * C)
    else:
        spool = None
    return wu_all, bu_all, skw_big, skb_big, spool


# ----------------------------------------------------------------------------
# XceptionBlock forward (NCHW in / NCHW out) -- one fused pallas_call.
# ----------------------------------------------------------------------------

def xception_block_forward(x_nchw, params, in_ch, out_ch, reps, strides,
                           grow_first, nb=None):
    del reps, grow_first  # structure already baked into params["units"]
    x = jnp.transpose(x_nchw, (0, 2, 3, 1)).astype(jnp.float32)     # NHWC
    N, H, W, _ = x.shape
    cmax = max(in_ch, out_ch)
    has_skip = params["skip"] is not None
    assert has_skip or strides == 1, "strides != 1 requires a skip conv"
    if strides != 1:
        assert H % strides == 0 and W % strides == 0, (
            "fused kernel assumes stride-divisible H, W")
        Ho, Wo = H // strides, W // strides
    else:
        Ho, Wo = H, W

    if in_ch < cmax:
        x = jnp.pad(x, ((0, 0), (0, 0), (0, 0), (0, cmax - in_ch)))
    C = cmax
    WC, WoC = W * C, Wo * C
    x_flat = x.reshape(N, H, WC)                                    # lane-dense

    wu, bu, skw, skb, spool = fold_params(params, in_ch, out_ch, C, W, Wo, strides)
    U = wu.shape[0]

    # images per grid step: batch the MXU M dim, keep grid even for v7x's 2 TCs
    if nb is None:
        divs = [d for d in (8, 4, 2, 1) if N % d == 0]
        even_grid = [d for d in divs if (N // d) % 2 == 0]
        nb = even_grid[0] if even_grid else divs[0]

    kernel = functools.partial(
        xception_block_kernel, NB=nb, H=H, W=W, C=C, U=U,
        strides=strides, has_skip=has_skip, Ho=Ho, Wo=Wo)

    in_specs = [
        pl.BlockSpec((nb, H, WC), lambda n: (n, 0, 0)),
        pl.BlockSpec((U, 3 * WC, WC), lambda n: (0, 0, 0)),
        pl.BlockSpec((U, 1, WC), lambda n: (0, 0, 0)),
    ]
    inputs = [x_flat, wu, bu]
    if has_skip:
        in_specs += [pl.BlockSpec((WC, WoC), lambda n: (0, 0)),
                     pl.BlockSpec((1, WoC), lambda n: (0, 0))]
        inputs += [skw, skb]
    if strides != 1:
        in_specs += [pl.BlockSpec((WC, WoC), lambda n: (0, 0))]
        inputs += [spool]

    out = pl.pallas_call(
        kernel,
        out_shape=jax.ShapeDtypeStruct((N, Ho, WoC), jnp.float32),
        grid=(N // nb,),
        in_specs=in_specs,
        out_specs=pl.BlockSpec((nb, Ho, WoC), lambda n: (n, 0, 0)),
        compiler_params=pltpu.CompilerParams(
            dimension_semantics=("parallel",),
            vmem_limit_bytes=32 * 1024 * 1024),
    )(*inputs)

    out = out.reshape(N, Ho, Wo, C)[..., :out_ch]
    return jnp.transpose(out, (0, 3, 1, 2))                         # back to NCHW


# ----------------------------------------------------------------------------
# Deterministic parameter construction (matches nn.Module __init__ shapes)
# ----------------------------------------------------------------------------

def bn_scale_bias(c, seed_offset):
    idx = jnp.arange(c, dtype=jnp.float32)
    gamma = 1.0 + 0.1 * jnp.cos(idx + seed_offset)
    beta = 0.05 * jnp.sin(idx + seed_offset)
    mean = 0.02 * (idx - c / 2.0)
    var = 1.0 + 0.01 * idx
    scale = gamma * jax.lax.rsqrt(var + 1e-5)
    bias = beta - mean * scale
    return scale.reshape(1, c), bias.reshape(1, c)


def make_params(key, in_ch, out_ch, reps, strides, grow_first):
    keys = jax.random.split(key, 64)
    ki = 0
    params = {}

    if strides != 1 or in_ch != out_ch:
        w = 0.2 * jax.random.normal(keys[ki], (in_ch, out_ch), jnp.float32); ki += 1
        sc, bi = bn_scale_bias(out_ch, 0.3)
        params["skip"] = (w, sc, bi)
    else:
        params["skip"] = None

    unit_ch = []
    filters = in_ch
    if grow_first:
        unit_ch.append((in_ch, out_ch))
        filters = out_ch
    for _ in range(reps - 1):
        unit_ch.append((filters, filters))
    if not grow_first:
        unit_ch.append((in_ch, out_ch))

    units = []
    for u, (ci, co) in enumerate(unit_ch):
        dw = 0.3 * jax.random.normal(keys[ki], (9, 1, 1, ci), jnp.float32); ki += 1
        pw = 0.3 * jax.random.normal(keys[ki], (ci, co), jnp.float32); ki += 1
        sc, bi = bn_scale_bias(co, 0.7 + u)
        units.append((dw, pw, sc, bi))
    params["units"] = units
    return params


# ----------------------------------------------------------------------------
# Pure-JAX f32 reference (mirrors the PyTorch forward) for verification
# ----------------------------------------------------------------------------

def reference_forward(x_nchw, params, in_ch, out_ch, reps, strides, grow_first):
    x = jnp.transpose(x_nchw, (0, 2, 3, 1)).astype(jnp.float32)
    if params["skip"] is not None:
        w, sc, bi = params["skip"]
        xs = x[:, ::strides, ::strides, :]
        res = (jnp.einsum("nhwc,cd->nhwd", xs, w)
               * sc.reshape(1, 1, 1, -1) + bi.reshape(1, 1, 1, -1))
    else:
        res = x
    y = x
    for dw, pw, sc, bi in params["units"]:
        cin = dw.shape[-1]
        y = jnp.maximum(y, 0.0)
        dwk = dw.reshape(3, 3, 1, cin)
        y = jax.lax.conv_general_dilated(
            y, dwk, (1, 1), ((1, 1), (1, 1)),
            dimension_numbers=("NHWC", "HWIO", "NHWC"),
            feature_group_count=cin)
        y = jnp.einsum("nhwc,cd->nhwd", y, pw)
        y = y * sc.reshape(1, 1, 1, -1) + bi.reshape(1, 1, 1, -1)
    if strides != 1:
        y = jax.lax.reduce_window(
            y, -jnp.inf, jax.lax.max,
            (1, 3, 3, 1), (1, strides, strides, 1),
            ((0, 0), (1, 1), (1, 1), (0, 0)))
    out = y + res
    return jnp.transpose(out, (0, 3, 1, 2))


def _check(out, ref, cfg):
    err = float(jnp.max(jnp.abs(out - ref)))
    # bf16 MXU operands in the kernel vs a pure-f32 reference: allow a few
    # percent relative error.
    tol = 5e-2 * (1.0 + float(jnp.max(jnp.abs(ref))))
    assert err < tol, f"{cfg}: max abs err {err} (tol {tol})"


# ----------------------------------------------------------------------------
# Main
# ----------------------------------------------------------------------------

if __name__ == "__main__":
    key = jax.random.PRNGKey(0)
    kx1, kp1, kx2, kp2, kx3, kp3 = jax.random.split(key, 6)

    N, H, W = 4, 16, 16

    # Config 1: downsampling block -> skip 1x1 conv + BN, MaxPool(3, 2, 1).
    Cin, Cout, reps, strides, grow_first = 4, 8, 2, 2, True
    x1 = jax.random.normal(kx1, (N, Cin, H, W), jnp.float32)
    p1 = make_params(kp1, Cin, Cout, reps, strides, grow_first)
    out1 = jax.block_until_ready(
        xception_block_forward(x1, p1, Cin, Cout, reps, strides, grow_first))
    ref1 = reference_forward(x1, p1, Cin, Cout, reps, strides, grow_first)
    assert out1.shape == (N, Cout, H // strides, W // strides), out1.shape
    _check(out1, ref1, "config1")

    # Config 2: identity-skip block (strides=1, Cin==Cout -> skip is None).
    x2 = jax.random.normal(kx2, (N, 8, H, W), jnp.float32)
    p2 = make_params(kp2, 8, 8, 2, 1, True)
    out2 = jax.block_until_ready(
        xception_block_forward(x2, p2, 8, 8, 2, 1, True))
    ref2 = reference_forward(x2, p2, 8, 8, 2, 1, True)
    assert out2.shape == (N, 8, H, W), out2.shape
    _check(out2, ref2, "config2")

    # Config 3: stride-1 block with channel growth (skip conv, grow_first=False).
    x3 = jax.random.normal(kx3, (N, 4, H, W), jnp.float32)
    p3 = make_params(kp3, 4, 8, 2, 1, False)
    out3 = jax.block_until_ready(
        xception_block_forward(x3, p3, 4, 8, 2, 1, False))
    ref3 = reference_forward(x3, p3, 4, 8, 2, 1, False)
    assert out3.shape == (N, 8, H, W), out3.shape
    _check(out3, ref3, "config3")

    print("KERNEL_OK")
</pallas_src>

<mosaic_0001>
module attributes {stable_mosaic.version = 11 : i64} {
  func.func @xception_block_kernel(%arg0: i32, %arg1: memref<2x16x128xf32, #tpu.memory_space<vmem>>, %arg2: memref<2x384x128xbf16, #tpu.memory_space<vmem>>, %arg3: memref<2x1x128xf32, #tpu.memory_space<vmem>>, %arg4: memref<128x64xbf16, #tpu.memory_space<vmem>>, %arg5: memref<1x64xf32, #tpu.memory_space<vmem>>, %arg6: memref<128x64xf32, #tpu.memory_space<vmem>>, %arg7: memref<2x8x64xf32, #tpu.memory_space<vmem>>) attributes {dimension_semantics = [#tpu.dimension_semantics<parallel>], iteration_bounds = array<i64: 2>, scalar_prefetch = 0 : i64, scratch_operands = 0 : i64, tpu.core_type = #tpu.core_type<tc>, window_params = [{transform_indices = @transform_0, window_bounds = array<i64: 2, 16, 128>}, {pipeline_mode = #tpu.pipeline_mode<synchronous>, transform_indices = @transform_1, window_bounds = array<i64: 2, 384, 128>}, {pipeline_mode = #tpu.pipeline_mode<synchronous>, transform_indices = @transform_2, window_bounds = array<i64: 2, 1, 128>}, {pipeline_mode = #tpu.pipeline_mode<synchronous>, transform_indices = @transform_3, window_bounds = array<i64: 128, 64>}, {pipeline_mode = #tpu.pipeline_mode<synchronous>, transform_indices = @transform_4, window_bounds = array<i64: 1, 64>}, {pipeline_mode = #tpu.pipeline_mode<synchronous>, transform_indices = @transform_5, window_bounds = array<i64: 128, 64>}, {transform_indices = @transform_6, window_bounds = array<i64: 2, 8, 64>}]} {
    %c0 = arith.constant 0 : index
    %c0_0 = arith.constant 0 : index
    %c0_1 = arith.constant 0 : index
    %0 = vector.load %arg1[%c0, %c0_0, %c0_1] : memref<2x16x128xf32, #tpu.memory_space<vmem>>, vector<2x16x128xf32>
    %cst = arith.constant 0.000000e+00 : f32
    %1 = vector.broadcast %cst : f32 to vector<2x16x128xf32>
    %2 = arith.maximumf %0, %1 : vector<2x16x128xf32>
    %3 = arith.truncf %2 : vector<2x16x128xf32> to vector<2x16x128xbf16>
    %cst_2 = arith.constant 0.000000e+00 : bf16
    %4 = vector.broadcast %cst_2 : bf16 to vector<2x1x128xbf16>
    %5 = vector.extract_strided_slice %3 {offsets = [0, 0, 0], sizes = [2, 15, 128], strides = [1, 1, 1]} : vector<2x16x128xbf16> to vector<2x15x128xbf16>
    %6 = tpu.concatenate %4, %5 in 1 : vector<2x1x128xbf16>, vector<2x15x128xbf16> -> vector<2x16x128xbf16>
    %7 = vector.extract_strided_slice %3 {offsets = [0, 1, 0], sizes = [2, 15, 128], strides = [1, 1, 1]} : vector<2x16x128xbf16> to vector<2x15x128xbf16>
    %8 = tpu.concatenate %7, %4 in 1 : vector<2x15x128xbf16>, vector<2x1x128xbf16> -> vector<2x16x128xbf16>
    %9 = tpu.concatenate %6, %3, %8 in 2 : vector<2x16x128xbf16>, vector<2x16x128xbf16>, vector<2x16x128xbf16> -> vector<2x16x384xbf16>
    %10 = vector.shape_cast %9 : vector<2x16x384xbf16> to vector<32x384xbf16>
    %c0_3 = arith.constant 0 : index
    %c0_4 = arith.constant 0 : index
    %c0_5 = arith.constant 0 : index
    %11 = vector.load %arg2[%c0_3, %c0_4, %c0_5] : memref<2x384x128xbf16, #tpu.memory_space<vmem>>, vector<1x384x128xbf16>
    %12 = vector.shape_cast %11 : vector<1x384x128xbf16> to vector<384x128xbf16>
    %cst_6 = arith.constant dense<0.000000e+00> : vector<32x128xf32>
    %13 = tpu.matmul %10, %12, %cst_6 {dimension_numbers = #tpu.dot_dimension_numbers<[1], [0], [0], [1], [0, 0, 1, 1], [], []>} : vector<32x384xbf16>, vector<384x128xbf16>, vector<32x128xf32> -> vector<32x128xf32>
    %c0_7 = arith.constant 0 : index
    %c0_8 = arith.constant 0 : index
    %c0_9 = arith.constant 0 : index
    %14 = vector.load %arg3[%c0_7, %c0_8, %c0_9] : memref<2x1x128xf32, #tpu.memory_space<vmem>>, vector<1x1x128xf32>
    %15 = vector.shape_cast %14 : vector<1x1x128xf32> to vector<1x128xf32>
    %16 = vector.broadcast %15 : vector<1x128xf32> to vector<32x128xf32>
    %17 = arith.addf %13, %16 : vector<32x128xf32>
    %18 = vector.shape_cast %17 : vector<32x128xf32> to vector<2x16x128xf32>
    %cst_10 = arith.constant 0.000000e+00 : f32
    %19 = vector.broadcast %cst_10 : f32 to vector<2x16x128xf32>
    %20 = arith.maximumf %18, %19 : vector<2x16x128xf32>
    %21 = arith.truncf %20 : vector<2x16x128xf32> to vector<2x16x128xbf16>
    %cst_11 = arith.constant 0.000000e+00 : bf16
    %22 = vector.broadcast %cst_11 : bf16 to vector<2x1x128xbf16>
    %23 = vector.extract_strided_slice %21 {offsets = [0, 0, 0], sizes = [2, 15, 128], strides = [1, 1, 1]} : vector<2x16x128xbf16> to vector<2x15x128xbf16>
    %24 = tpu.concatenate %22, %23 in 1 : vector<2x1x128xbf16>, vector<2x15x128xbf16> -> vector<2x16x128xbf16>
    %25 = vector.extract_strided_slice %21 {offsets = [0, 1, 0], sizes = [2, 15, 128], strides = [1, 1, 1]} : vector<2x16x128xbf16> to vector<2x15x128xbf16>
    %26 = tpu.concatenate %25, %22 in 1 : vector<2x15x128xbf16>, vector<2x1x128xbf16> -> vector<2x16x128xbf16>
    %27 = tpu.concatenate %24, %21, %26 in 2 : vector<2x16x128xbf16>, vector<2x16x128xbf16>, vector<2x16x128xbf16> -> vector<2x16x384xbf16>
    %28 = vector.shape_cast %27 : vector<2x16x384xbf16> to vector<32x384xbf16>
    %c1 = arith.constant 1 : index
    %c0_12 = arith.constant 0 : index
    %c0_13 = arith.constant 0 : index
    %29 = vector.load %arg2[%c1, %c0_12, %c0_13] : memref<2x384x128xbf16, #tpu.memory_space<vmem>>, vector<1x384x128xbf16>
    %30 = vector.shape_cast %29 : vector<1x384x128xbf16> to vector<384x128xbf16>
    %cst_14 = arith.constant dense<0.000000e+00> : vector<32x128xf32>
    %31 = tpu.matmul %28, %30, %cst_14 {dimension_numbers = #tpu.dot_dimension_numbers<[1], [0], [0], [1], [0, 0, 1, 1], [], []>} : vector<32x384xbf16>, vector<384x128xbf16>, vector<32x128xf32> -> vector<32x128xf32>
    %c1_15 = arith.constant 1 : index
    %c0_16 = arith.constant 0 : index
    %c0_17 = arith.constant 0 : index
    %32 = vector.load %arg3[%c1_15, %c0_16, %c0_17] : memref<2x1x128xf32, #tpu.memory_space<vmem>>, vector<1x1x128xf32>
    %33 = vector.shape_cast %32 : vector<1x1x128xf32> to vector<1x128xf32>
    %34 = vector.broadcast %33 : vector<1x128xf32> to vector<32x128xf32>
    %35 = arith.addf %31, %34 : vector<32x128xf32>
    %36 = vector.shape_cast %35 : vector<32x128xf32> to vector<2x16x128xf32>
    %cst_18 = arith.constant 0xFF800000 : f32
    %37 = vector.broadcast %cst_18 : f32 to vector<2x1x128xf32>
    %38 = vector.extract_strided_slice %36 {offsets = [0, 0, 0], sizes = [2, 15, 128], strides = [1, 1, 1]} : vector<2x16x128xf32> to vector<2x15x128xf32>
    %39 = tpu.concatenate %37, %38 in 1 : vector<2x1x128xf32>, vector<2x15x128xf32> -> vector<2x16x128xf32>
    %40 = vector.extract_strided_slice %36 {offsets = [0, 1, 0], sizes = [2, 15, 128], strides = [1, 1, 1]} : vector<2x16x128xf32> to vector<2x15x128xf32>
    %41 = tpu.concatenate %40, %37 in 1 : vector<2x15x128xf32>, vector<2x1x128xf32> -> vector<2x16x128xf32>
    %42 = arith.maximumf %39, %41 : vector<2x16x128xf32>
    %43 = arith.maximumf %36, %42 : vector<2x16x128xf32>
    %44 = tpu.iota {dimensions = array<i32: 2>} : vector<2x16x128xi32>
    %c8_i32 = arith.constant 8 : i32
    %45 = tpu.dynamic_rotate %43 by %c8_i32 dim 2 : vector<2x16x128xf32>, i32 -> vector<2x16x128xf32>
    %c8_i32_19 = arith.constant 8 : i32
    %46 = vector.broadcast %c8_i32_19 : i32 to vector<2x16x128xi32>
    %47 = arith.cmpi sge, %44, %46 : vector<2x16x128xi32>
    %cst_20 = arith.constant 0xFF800000 : f32
    %48 = vector.broadcast %cst_20 : f32 to vector<2x16x128xf32>
    %49 = arith.select %47, %45, %48 : vector<2x16x128xi1>, vector<2x16x128xf32>
    %c120_i32 = arith.constant 120 : i32
    %50 = tpu.dynamic_rotate %43 by %c120_i32 dim 2 : vector<2x16x128xf32>, i32 -> vector<2x16x128xf32>
    %c120_i32_21 = arith.constant 120 : i32
    %51 = vector.broadcast %c120_i32_21 : i32 to vector<2x16x128xi32>
    %52 = arith.cmpi slt, %44, %51 : vector<2x16x128xi32>
    %cst_22 = arith.constant 0xFF800000 : f32
    %53 = vector.broadcast %cst_22 : f32 to vector<2x16x128xf32>
    %54 = arith.select %52, %50, %53 : vector<2x16x128xi1>, vector<2x16x128xf32>
    %55 = arith.maximumf %49, %54 : vector<2x16x128xf32>
    %56 = arith.maximumf %43, %55 : vector<2x16x128xf32>
    %57 = vector.shape_cast %56 : vector<2x16x128xf32> to vector<2x8x2x128xf32>
    %58 = vector.extract_strided_slice %57 {offsets = [0, 0, 0, 0], sizes = [2, 8, 1, 128], strides = [1, 1, 1, 1]} : vector<2x8x2x128xf32> to vector<2x8x1x128xf32>
    %59 = vector.shape_cast %58 : vector<2x8x1x128xf32> to vector<2x8x128xf32>
    %60 = vector.shape_cast %59 : vector<2x8x128xf32> to vector<16x128xf32>
    %c0_23 = arith.constant 0 : index
    %c0_24 = arith.constant 0 : index
    %61 = vector.load %arg6[%c0_23, %c0_24] : memref<128x64xf32, #tpu.memory_space<vmem>>, vector<128x64xf32>
    %cst_25 = arith.constant dense<0.000000e+00> : vector<16x64xf32>
    %62 = tpu.matmul %60, %61, %cst_25 {dimension_numbers = #tpu.dot_dimension_numbers<[1], [0], [0], [1], [0, 0, 1, 1], [], []>} : vector<16x128xf32>, vector<128x64xf32>, vector<16x64xf32> -> vector<16x64xf32>
    %63 = vector.shape_cast %0 : vector<2x16x128xf32> to vector<2x8x2x128xf32>
    %64 = vector.extract_strided_slice %63 {offsets = [0, 0, 0, 0], sizes = [2, 8, 1, 128], strides = [1, 1, 1, 1]} : vector<2x8x2x128xf32> to vector<2x8x1x128xf32>
    %65 = vector.shape_cast %64 : vector<2x8x1x128xf32> to vector<2x8x128xf32>
    %66 = vector.shape_cast %65 : vector<2x8x128xf32> to vector<16x128xf32>
    %67 = arith.truncf %66 : vector<16x128xf32> to vector<16x128xbf16>
    %c0_26 = arith.constant 0 : index
    %c0_27 = arith.constant 0 : index
    %68 = vector.load %arg4[%c0_26, %c0_27] : memref<128x64xbf16, #tpu.memory_space<vmem>>, vector<128x64xbf16>
    %cst_28 = arith.constant dense<0.000000e+00> : vector<16x64xf32>
    %69 = tpu.matmul %67, %68, %cst_28 {dimension_numbers = #tpu.dot_dimension_numbers<[1], [0], [0], [1], [0, 0, 1, 1], [], []>} : vector<16x128xbf16>, vector<128x64xbf16>, vector<16x64xf32> -> vector<16x64xf32>
    %c0_29 = arith.constant 0 : index
    %c0_30 = arith.constant 0 : index
    %70 = vector.load %arg5[%c0_29, %c0_30] : memref<1x64xf32, #tpu.memory_space<vmem>>, vector<1x64xf32>
    %71 = vector.broadcast %70 : vector<1x64xf32> to vector<16x64xf32>
    %72 = arith.addf %69, %71 : vector<16x64xf32>
    %73 = arith.addf %62, %72 : vector<16x64xf32>
    %74 = vector.shape_cast %73 : vector<16x64xf32> to vector<2x8x64xf32>
    %c0_31 = arith.constant 0 : index
    %c0_32 = arith.constant 0 : index
    %c0_33 = arith.constant 0 : index
    %75 = vector.load %arg7[%c0_31, %c0_32, %c0_33] : memref<2x8x64xf32, #tpu.memory_space<vmem>>, vector<2x8x64xf32>
    tpu.vector_store %arg7[%c0_31, %c0_32, %c0_33], %74 {strides = array<i32>} : memref<2x8x64xf32, #tpu.memory_space<vmem>>, vector<2x8x64xf32>,
    return
  }
  func.func @transform_0(%arg0: i32) -> (i32, i32, i32) {
    %c0_i32 = arith.constant 0 : i32
    %c0_i32_0 = arith.constant 0 : i32
    %c0_i32_1 = arith.constant 0 : i32
    return %arg0, %c0_i32, %c0_i32_0 : i32, i32, i32
  }
  func.func @transform_1(%arg0: i32) -> (i32, i32, i32) {
    %c0_i32 = arith.constant 0 : i32
    %c0_i32_0 = arith.constant 0 : i32
    %c0_i32_1 = arith.constant 0 : i32
    %c0_i32_2 = arith.constant 0 : i32
    return %c0_i32, %c0_i32_0, %c0_i32_1 : i32, i32, i32
  }
  func.func @transform_2(%arg0: i32) -> (i32, i32, i32) {
    %c0_i32 = arith.constant 0 : i32
    %c0_i32_0 = arith.constant 0 : i32
    %c0_i32_1 = arith.constant 0 : i32
    %c0_i32_2 = arith.constant 0 : i32
    return %c0_i32, %c0_i32_0, %c0_i32_1 : i32, i32, i32
  }
  func.func @transform_3(%arg0: i32) -> (i32, i32) {
    %c0_i32 = arith.constant 0 : i32
    %c0_i32_0 = arith.constant 0 : i32
    %c0_i32_1 = arith.constant 0 : i32
    return %c0_i32, %c0_i32_0 : i32, i32
  }
  func.func @transform_4(%arg0: i32) -> (i32, i32) {
    %c0_i32 = arith.constant 0 : i32
    %c0_i32_0 = arith.constant 0 : i32
    %c0_i32_1 = arith.constant 0 : i32
    return %c0_i32, %c0_i32_0 : i32, i32
  }
  func.func @transform_5(%arg0: i32) -> (i32, i32) {
    %c0_i32 = arith.constant 0 : i32
    %c0_i32_0 = arith.constant 0 : i32
    %c0_i32_1 = arith.constant 0 : i32
    return %c0_i32, %c0_i32_0 : i32, i32
  }
  func.func @transform_6(%arg0: i32) -> (i32, i32, i32) {
    %c0_i32 = arith.constant 0 : i32
    %c0_i32_0 = arith.constant 0 : i32
    %c0_i32_1 = arith.constant 0 : i32
    return %arg0, %c0_i32, %c0_i32_0 : i32, i32, i32
  }
}

</mosaic_0001>

<bundles_post_ra>
// kernel: tpu_custom_call.1
= control target key start
LH: loop header
LB: loop body
LE: loop exit
PB: predicated region body
PF: predicated region fallthrough
CT: control target
= control target key end

     0   :  { %11 = vsyncpa [#allocation3], 0  ;;  %s2146_s0 = inlined_call_operand.vmem [shape: f32[4,16,128], index: 0, kind: input, shape index: {}]   ;;  %s2147_s1 = inlined_call_operand.hbm [shape: bf16[2,384,128], index: 1, kind: input, shape index: {}]   ;;  %s2148_s2 = inlined_call_operand.vmem [shape: f32[2,1,128], index: 2, kind: input, shape index: {}]   ;;  %s2149_s3 = inlined_call_operand.vmem [shape: bf16[128,64], index: 3, kind: input, shape index: {}]   ;;  %s2150_s4 = inlined_call_operand.vmem [shape: f32[1,64], index: 4, kind: input, shape index: {}]   ;;  %s2151_s5 = inlined_call_operand.vmem [shape: f32[128,64], index: 5, kind: input, shape index: {}]   ;;  %s2152_s6 = inlined_call_operand.hbm [shape: f32[4,8,64], index: 6, kind: output, shape index: {}]  }
   0x1   :  { %12 = vsyncpa [#allocation4], 0 }
   0x2   :  { %14 = vsyncpa [#allocation4 + $0x1], 0  ;;  %s1843_s21 = smov 0   ;;  %s1845_s22 = smov 0  }
   0x3   :  { %s1847_s23 = smov 0   ;;  %s1849_s24 = smov 0  }
   0x4 LB: > { %s1864_s25 = sadd.s32 4294967295, %s1800_s24   ;;  %s1333_s26 = sadd.s32 4294967294, %s1800_s24   ;;  %s1800_s24 = sphi %s1849_s24, %s2162_s24   ;;  %s1796_s23 = sphi %s1847_s23, %s2161_s23   ;;  %s1792_s22 = sphi %s1845_s22, %s2160_s22   ;;  %s1788_s21 = sphi %s1843_s21, %s2159_s21  }
   0x5   : > { %s1868_s27 = sadd.s32 1, %s1800_s24   ;;  %s158_s28 = sadd.s32 1, %s1796_s23 }
   0x6   : > { %s155_s29 = ssub.s32 %s1800_s24, %s1868_s27  ;;  %p168_p0 = scmp.ne.s32.totalorder %s1796_s23, %s1792_s22 }
   0x7   : > { %p156_p1 = scmp.eq.s32.totalorder %s155_s29, 0  ;;  %p169_p2 = scmp.eq.s32.totalorder %s1864_s25, 1 }
   0x8   : > { %p174_p3 = scmp.ne.s32.totalorder %s1792_s22, %s1788_s21  ;;  %p175_p4 = scmp.eq.s32.totalorder %s1333_s26, 1 }
   0x9   : > { %s1879_s30 = scalar_select %p156_p1, %s1796_s23, %s158_s28  }
   0xa   : > { %p1881_p5 = por %p169_p2, %p168_p0  ;;  %p1885_p6 = por %p175_p4, %p174_p3 }
   0xb   : > { %p1334_p7 = scmp.ge.s32.totalorder %s1800_s24, 1  ;;  %p182_p8 = scmp.lt.s32.totalorder %s1800_s24, 3 }
   0xc   : > { %p1645_p9 = scmp.eq.s32.totalorder %s1864_s25, 0  ;;  %s193_s11 = sshll.u32 %s2147_s1, 4  ;;  %s194_s11 = int_to_ptr.hbm [resolvable:$true] %s193_s11 }
   0xd   : > { %p183_p10 = pnand %p1334_p7, %p182_p8  ;;  %s1802_s12 = smov [#allocation2]  }
   0xe   : > { %s195_s13 = sshll.u32 %s1802_s12, 4  ;;  %s1803_s14 = smov 64   ;;  %s196_s13 = int_to_ptr.vmem [resolvable:$true] %s195_s13 }
   0xf   : > { %p1637_p11 = pneg %p183_p10  ;;  %s1804_s15 = smov 4  }
  0x10   : > { %233 = sbr.rel (%p183_p10) target bundleno = 661 (0x295), region = 44 }
  0x11   : > { %p1638_p12 = pnand %p1645_p9, %p1637_p11 }
  0x13   : > { %1640 = dma.hbm_to_vmem [thread:$0]  (!%p1638_p12), %s194_s11, 6144, %s196_s13, [#allocation3], %s1803_s14, %s1803_s14, %s1804_s15  }
  0x15   : > { %1779 = dma.done.wait (%p1645_p9), [#allocation3], 6144  }
  0x16   : > { %1781 = vsyncadd (%p1645_p9), [#allocation3], 4294961152  ;;  %s1340_s16 = sshll.u32 %s1864_s25, 1  ;;  %v1581_v0 = vld [vmem:[#allocation2 + $0x38] sm:$0xff]  ;;  %v1580_v3 = vld [vmem:[#allocation2 + $0x30] sm:$0xff]  ;;  %vm312_vm0 = vcmask 1040384  }
  0x17   : > { %p266_p13 = scmp.lt.s32.totalorder %s1340_s16, 3  ;;  %v1589_v1 = vld [vmem:[#allocation2 + $0x78] sm:$0xff]  ;;  %526 = vmatpush.bf16.msra.mxu0 %v1581_v0  ;;  %v1588_v4 = vld [vmem:[#allocation2 + $0x70] sm:$0xff]  ;;  %v1579_v6 = vld [vmem:[#allocation2 + $0x28] sm:$0xff]  ;;  %vm313_vm1 = vsmask.f32 256 }
  0x18   : > { %v1597_v2 = vld [vmem:[#allocation2 + $0xb8] sm:$0xff]  ;;  %545 = vmatpush.bf16.msra.mxu1 %v1589_v1  ;;  %v1596_v5 = vld [vmem:[#allocation2 + $0xb0] sm:$0xff]  ;;  %v1587_v7 = vld [vmem:[#allocation2 + $0x68] sm:$0xff]  ;;  %vm323_vm2 = vcmask 1047552   ;;  %vm324_vm3 = vsmask.f32 7424 }
  0x19   : > { %s2164_s16 = smov (!%p266_p13, %s1340_s16), 3  ;;  %564 = vmatpush.bf16.msra.mxu2 %v1597_v2  ;;  %v1595_v8 = vld [vmem:[#allocation2 + $0xa8] sm:$0xff]  ;;  %v1578_v11 = vld [vmem:[#allocation2 + $0x20] sm:$0xff]  ;;  %v1577_v20 = vld [vmem:[#allocation2 + $0x18] sm:$0xff]  ;;  %vm901_vm6 = vcmask 1046528   ;;  %s1805_s10 = smov 8  }
  0x1a   : > { %s1573_s17 = sshll.u32 %s2164_s16, 4  ;;  %v1586_v14 = vld [vmem:[#allocation2 + $0x60] sm:$0xff]  ;;  %v1585_v21 = vld [vmem:[#allocation2 + $0x58] sm:$0xff]  ;;  %v1576_v26 = vld [vmem:[#allocation2 + $0x10] sm:$0xff]  ;;  %s1806_s11 = smov 120   ;;  %vm1087_vm7 = vcmask 1041409  }
  0x1b   : > { %s270_s20 = scalar_lea.vmem %s2146_s0, %s1573_s17  ;;  %527 = vmatpush.bf16.msra.mxu0 %v1580_v3  ;;  %v1594_v15 = vld [vmem:[#allocation2 + $0xa0] sm:$0xff]  ;;  %v1593_v22 = vld [vmem:[#allocation2 + $0x98] sm:$0xff]  ;;  %v1584_v27 = vld [vmem:[#allocation2 + $0x50] sm:$0xff]  ;;  %vm1090_vm8 = vcmask 1042434   ;;  %vm1093_vm9 = vcmask 1043459   ;;  %vm1096_vm10 = vcmask 1044484  }
  0x1c   : > { %546 = vmatpush.bf16.msra.mxu1 %v1588_v4  ;;  %v1905_v9 = vld [vmem:[%s270_s20] sm:$0xff]  ;;  %v1907_v10 = vld [vmem:[%s270_s20 + $0x8] sm:$0xff]  ;;  %v1911_v24 = vld [vmem:[%s270_s20 + $0x10] sm:$0xff]  ;;  %vm1099_vm11 = vcmask 1045509   ;;  %vm1102_vm12 = vcmask 1046534   ;;  %vm1105_vm13 = vcmask 1047559  }
  0x1d   : > { %565 = vmatpush.bf16.msra.mxu2 %v1596_v5  ;;  %v278_v12 = vmax.f32 %v1905_v9, 0.0  ;;  %v279_v13 = vmax.f32 %v1907_v10, 0.0  ;;  %v1913_v25 = vld [vmem:[%s270_s20 + $0x18] sm:$0xff]  ;;  %v280_v29 = vmax.f32 %v1911_v24, 0.0  ;;  %v1592_v31 = vld [vmem:[#allocation2 + $0x90] sm:$0xff]  ;;  %v1575_v33 = vld [vmem:[#allocation2 + $0x8] sm:$0xff] }
  0x1e   : > { %v281_v30 = vmax.f32 %v1913_v25, 0.0  ;;  %v1583_v34 = vld [vmem:[#allocation2 + $0x48] sm:$0xff]  ;;  %v1574_v40 = vld [vmem:[#allocation2] sm:$0xff]  ;;  %vm1918_vm4 = vmand %vm312_vm0, %vm313_vm1  ;;  %s262_s20 = sand.u32 1, %s1792_s22   ;;  %s1630_s29 = sshll.u32 %s1864_s25, 4 }
  0x1f   : > { %528 = vmatpush.bf16.msra.mxu0 %v1579_v6  ;;  %v282_v16 = vpack.c.bf16 %v278_v12, %v278_v12  ;;  %v283_v17 = vpack.c.bf16 %v279_v13, %v279_v13  ;;  %v284_v36 = vpack.c.bf16 %v280_v29, %v280_v29  ;;  %v1591_v38 = vld [vmem:[#allocation2 + $0x88] sm:$0xff]  ;;  %v1582_v41 = vld [vmem:[#allocation2 + $0x40] sm:$0xff]  ;;  %v1613_v48 = vld [vmem:[#allocation2 + $0x138] sm:$0xff]  ;;  %s1339_s26 = sshll.u32 %s262_s20, 4  ;;  %s1255_s12 = scalar_lea.hbm %s2152_s6, %s1630_s29 }
  0x20   : > { %547 = vmatpush.bf16.msra.mxu1 %v1587_v7  ;;  %v285_v37 = vpack.c.bf16 %v281_v30, %v281_v30  ;;  %v1590_v45 = vld [vmem:[#allocation2 + $0x80] sm:$0xff]  ;;  %vm1922_vm5 = vmand %vm323_vm2, %vm324_vm3  ;;  %v1612_v53 = vld [vmem:[#allocation2 + $0x130] sm:$0xff]  ;;  %s264_s28 = scalar_lea.vmem [#allocation5], %s1339_s26  ;;  %s1258_s14 = sshll.u32 %s1255_s12, 4  ;;  %s1259_s14 = int_to_ptr.hbm [resolvable:$true] %s1258_s14 }
  0x21   : > { %566 = vmatpush.bf16.msra.mxu2 %v1595_v8  ;;  %v290_v18 = vunpack.c.l.b16 %v282_v16  ;;  %v291_v19 = vunpack.c.l.b16 %v283_v17  ;;  %v292_v43 = vunpack.c.l.b16 %v284_v36  ;;  %v1605_v62 = vld [vmem:[#allocation2 + $0xf8] sm:$0xff]  ;;  %v1611_v0 = vld [vmem:[#allocation2 + $0x128] sm:$0xff]  ;;  %v1604_v1 = vld [vmem:[#allocation2 + $0xf0] sm:$0xff]  ;;  %s1256_s13 = sshll.u32 %s264_s28, 4  ;;  %s1244_s15 = scalar_lea.sflag [#allocation4], %s262_s20  ;;  %s1257_s13 = int_to_ptr.vmem [resolvable:$true] %s1256_s13 }
  0x22   : > { %v293_v44 = vunpack.c.l.b16 %v285_v37  ;;  %v1621_v63 = vld [vmem:[#allocation2 + $0x178] sm:$0xff]  ;;  %827 = vmatpush.bf16.msra.mxu3 %v1605_v62  ;;  %v1620_v2 = vld [vmem:[#allocation2 + $0x170] sm:$0xff]  ;;  %v1610_v3 = vld [vmem:[#allocation2 + $0x120] sm:$0xff]  ;;  %s1748_s16 = sshra.s32 %s1259_s14, 4  ;;  %s1754_s19 = scalar_lea.hbm %s2152_s6, 32  ;;  %s1749_s16 = int_to_ptr.hbm [resolvable:$true] %s1748_s16 }
  0x23   : > { %529 = vmatpush.bf16.msra.mxu0 %v1578_v11  ;;  %v294_v23 = vpack.c.b16 %v291_v19, %v290_v18  ;;  %v1603_v4 = vld [vmem:[#allocation2 + $0xe8] sm:$0xff]  ;;  %v1609_v6 = vld [vmem:[#allocation2 + $0x118] sm:$0xff]  ;;  %v1602_v7 = vld [vmem:[#allocation2 + $0xe0] sm:$0xff]  ;;  %s1750_s17 = scalar_lea.hbm %s1749_s16, 16  ;;  %p1755_p3 = scmp.lt.s32.totalorder %s1749_s16, %s2152_s6 }
  0x24   : > { %548 = vmatpush.bf16.msra.mxu1 %v1586_v14  ;;  %v295_v51 = vpack.c.b16 %v293_v44, %v292_v43  ;;  %v1619_v5 = vld [vmem:[#allocation2 + $0x168] sm:$0xff]  ;;  %v1618_v8 = vld [vmem:[#allocation2 + $0x160] sm:$0xff]  ;;  %v1608_v11 = vld [vmem:[#allocation2 + $0x110] sm:$0xff]  ;;  %p1751_p0 = scmp.ne.s32.totalorder %s1749_s16, %s1750_s17  ;;  %p1756_p4 = scmp.lt.s32.totalorder %s1754_s19, %s1750_s17 }
  0x25   : > { %567 = vmatpush.bf16.msra.mxu2 %v1594_v15  ;;  %v297_v28 = vshrl.u32 %v294_v23, 16  ;;  %v300_v32 = vshll.u32 %v294_v23, 16  ;;  %v1601_v12 = vld [vmem:[#allocation2 + $0xd8] sm:$0xff]  ;;  %v1607_v14 = vld [vmem:[#allocation2 + $0x108] sm:$0xff]  ;;  %v1600_v15 = vld [vmem:[#allocation2 + $0xd0] sm:$0xff] }
  0x26   : > { %v304_v54 = vshrl.u32 %v295_v51, 16  ;;  %v307_v55 = vshll.u32 %v295_v51, 16  ;;  %828 = vmatpush.bf16.msra.mxu3 %v1604_v1  ;;  %v1617_v13 = vld [vmem:[#allocation2 + $0x158] sm:$0xff]  ;;  %v1616_v16 = vld [vmem:[#allocation2 + $0x150] sm:$0xff]  ;;  %v1606_v17 = vld [vmem:[#allocation2 + $0x100] sm:$0xff]  ;;  %p1752_p1 = pnand %p1751_p0, %p1881_p5  ;;  %p1757_p7 = por %p1756_p4, %p1755_p3 }
  0x27   : > { %530 = vmatpush.bf16.msra.mxu0 %v1577_v20  ;;  %v299_v35 = vrot.slane %v297_v28, 7  ;;  %v317_v39 = vrot.slane %v300_v32, 1  ;;  %v1599_v18 = vld [vmem:[#allocation2 + $0xc8] sm:$0xff]  ;;  %v1598_v20 = vld [vmem:[#allocation2 + $0xc0] sm:$0xff] }
  0x28   : > { %549 = vmatpush.bf16.msra.mxu1 %v1585_v21  ;;  %v306_v56 = vrot.slane %v304_v54, 7  ;;  %v319_v57 = vrot.slane %v307_v55, 1  ;;  %v1615_v19 = vld [vmem:[#allocation2 + $0x148] sm:$0xff]  ;;  %v1614_v21 = vld [vmem:[#allocation2 + $0x140] sm:$0xff]  ;;  %p1753_p2 = pneg %p1752_p1 }
  0x29   : > { %568 = vmatpush.bf16.msra.mxu2 %v1593_v22  ;;  %v302_v42 = vor.u32 %v300_v32, %v299_v35  ;;  %v318_v47 = vor.u32 %v317_v39, %v297_v28  ;;  %v1701_v22 = vld [vmem:[%s2148_s2] ss:$0 sm:$0xff] }
  0x2a   : > { %v309_v58 = vor.u32 %v307_v55, %v306_v56  ;;  %v320_v59 = vor.u32 %v319_v57, %v304_v54  ;;  %829 = vmatpush.bf16.msra.mxu3 %v1603_v4  ;;  %p1758_p8 = pnand %p1757_p7, %p1753_p2 }
  0x2b   : > { %531 = vmatpush.bf16.msra.mxu0 %v1576_v26  ;;  %v315_v50 = vsel %vm1918_vm4, 0, %v302_v42  ;;  %v326_v52 = vsel %vm1922_vm5, %v318_v47, 0 }
  0x2c   : > { %550 = vmatpush.bf16.msra.mxu1 %v1584_v27  ;;  %v316_v60 = vsel %vm1918_vm4, 0, %v309_v58  ;;  %v327_v61 = vsel %vm1922_vm5, %v320_v59, 0 }
  0x2d   : > { %569 = vmatpush.bf16.msra.mxu2 %v1592_v31 }
  0x2e   : > { %830 = vmatpush.bf16.msra.mxu3 %v1602_v7 }
  0x2f   : > { %532 = vmatpush.bf16.msra.mxu0 %v1575_v33 }
  0x30   : > { %551 = vmatpush.bf16.msra.mxu1 %v1583_v34 }
  0x31   : > { %570 = vmatpush.bf16.msra.mxu2 %v1591_v38 }
  0x32   : > { %831 = vmatpush.bf16.msra.mxu3 %v1601_v12 }
  0x33   : > { %533 = vmatpush.bf16.msra.mxu0 %v1574_v40 }
  0x34   : > { %552 = vmatpush.bf16.msra.mxu1 %v1582_v41 }
  0x35   : > { %571 = vmatpush.bf16.msra.mxu2 %v1590_v45 }
  0x36   : > { %534 = vmatmul.bf16.vlgmr.msra.gmra.mxu0 %v315_v50  ;;  %832 = vmatpush.bf16.msra.mxu3 %v1600_v15 }
  0x37   : > { %846 = vmatpush.bf16.msrb.mxu0 %v1613_v48  ;;  %553 = vmatmul.bf16.vlgmr.msra.gmra.mxu1 %v294_v23 }
  0x38   : > { %572 = vmatmul.bf16.vlgmr.msra.gmra.mxu2 %v326_v52  ;;  %865 = vmatpush.bf16.msrb.mxu1 %v1621_v63 }
  0x3a   : > { %833 = vmatpush.bf16.msra.mxu3 %v1599_v18 }
  0x3b   : > { %847 = vmatpush.bf16.msrb.mxu0 %v1612_v53 }
  0x3c   : > { %866 = vmatpush.bf16.msrb.mxu1 %v1620_v2 }
  0x3e   : > { %834 = vmatpush.bf16.msra.mxu3 %v1598_v20  ;;  %v1702_v20 = vld [vmem:[%s2148_s2 + $0x1] ss:$0 sm:$0xff] }
  0x3f   : > { %848 = vmatpush.bf16.msrb.mxu0 %v1611_v0 }
  0x40   : > { %867 = vmatpush.bf16.msrb.mxu1 %v1619_v5 }
  0x43   : > { %849 = vmatpush.bf16.msrb.mxu0 %v1610_v3 }
  0x44   : > { %868 = vmatpush.bf16.msrb.mxu1 %v1618_v8 }
  0x46   : > { %539 = vmatmul.bf16.gmra.mxu0 %v316_v60 }
  0x47   : > { %558 = vmatmul.bf16.gmra.mxu1 %v295_v51  ;;  %850 = vmatpush.bf16.msrb.mxu0 %v1609_v6 }
  0x48   : > { %577 = vmatmul.bf16.gmra.mxu2 %v327_v61  ;;  %869 = vmatpush.bf16.msrb.mxu1 %v1617_v13 }
  0x4b   : > { %851 = vmatpush.bf16.msrb.mxu0 %v1608_v11 }
  0x4c   : > { %870 = vmatpush.bf16.msrb.mxu1 %v1616_v16 }
  0x4f   : > { %852 = vmatpush.bf16.msrb.mxu0 %v1607_v14 }
  0x50   : > { %871 = vmatpush.bf16.msrb.mxu1 %v1615_v19 }
  0x53   : > { %853 = vmatpush.bf16.msrb.mxu0 %v1606_v17 }
  0x54   : > { %872 = vmatpush.bf16.msrb.mxu1 %v1614_v21 }
  0xb3   : > { %v535_v23 = vpop.f32.mrf.mxu0 }
  0xb4   : > { %v554_v26 = vpop.f32.mrf.mxu1  ;;  %v536_v27 = vadd.f32 %v1701_v22, %v535_v23 }
  0xb6   : > { %v555_v28 = vadd.f32 %v554_v26, %v536_v27 }
  0xbb   : > { %v573_v29 = vpop.f32.mrf.mxu2  ;;  %v537_v30 = vpop.f32.mrf.mxu0 }
  0xbc   : > { %v556_v31 = vpop.f32.mrf.mxu1  ;;  %v574_v32 = vadd.f32 %v573_v29, %v555_v28  ;;  %v538_v33 = vadd.f32 %v1701_v22, %v537_v30 }
  0xbe   : > { %v583_v34 = vmax.f32 %v574_v32, 0.0  ;;  %v557_v35 = vadd.f32 %v556_v31, %v538_v33 }
  0xc0   : > { %v587_v39 = vpack.c.bf16 %v583_v34, %v583_v34 }
  0xc2   : > { %v595_v44 = vunpack.c.l.b16 %v587_v39 }
  0xc3   : > { %v575_v36 = vpop.f32.mrf.mxu2  ;;  %v540_v38 = vpop.f32.mrf.mxu0 }
  0xc4   : > { %v576_v37 = vadd.f32 %v575_v36, %v557_v35  ;;  %v541_v41 = vadd.f32 %v1701_v22, %v540_v38  ;;  %v559_v42 = vpop.f32.mrf.mxu1 }
  0xc6   : > { %v584_v40 = vmax.f32 %v576_v37, 0.0  ;;  %v560_v47 = vadd.f32 %v559_v42, %v541_v41 }
  0xc8   : > { %v588_v43 = vpack.c.bf16 %v584_v40, %v584_v40 }
  0xca   : > { %v596_v45 = vunpack.c.l.b16 %v588_v43 }
  0xcb   : > { %v578_v48 = vpop.f32.mrf.mxu2  ;;  %v542_v50 = vpop.f32.mrf.mxu0 }
  0xcc   : > { %v599_v51 = vpack.c.b16 %v596_v45, %v595_v44  ;;  %v579_v52 = vadd.f32 %v578_v48, %v560_v47  ;;  %v543_v53 = vadd.f32 %v1701_v22, %v542_v50  ;;  %v561_v58 = vpop.f32.mrf.mxu1 }
  0xce   : > { %854 = vmatmul.bf16.vlgmr.msrb.gmra.mxu0 %v599_v51  ;;  %v602_v54 = vshrl.u32 %v599_v51, 16  ;;  %v605_v55 = vshll.u32 %v599_v51, 16  ;;  %v585_v59 = vmax.f32 %v579_v52, 0.0  ;;  %v562_v60 = vadd.f32 %v561_v58, %v543_v53 }
  0xd0   : > { %v604_v56 = vrot.slane %v602_v54, 7  ;;  %v619_v57 = vrot.slane %v605_v55, 1  ;;  %v589_v3 = vpack.c.bf16 %v585_v59, %v585_v59 }
  0xd2   : > { %v607_v61 = vor.u32 %v605_v55, %v604_v56  ;;  %v620_v62 = vor.u32 %v619_v57, %v602_v54  ;;  %v597_v6 = vunpack.c.l.b16 %v589_v3 }
  0xd3   : > { %v580_v63 = vpop.f32.mrf.mxu2 }
  0xd4   : > { %v581_v0 = vadd.f32 %v580_v63, %v562_v60  ;;  %v617_v1 = vsel %vm1918_vm4, 0, %v607_v61  ;;  %v625_v2 = vsel %vm1922_vm5, %v620_v62, 0 }
  0xd5   : > { %835 = vmatmul.bf16.vlgmr.msra.gmra.mxu3 %v617_v1  ;;  %873 = vmatmul.bf16.vlgmr.msrb.gmra.mxu1 %v625_v2 }
  0xd6   : > { %v586_v4 = vmax.f32 %v581_v0, 0.0 }
  0xd8   : > { %v590_v5 = vpack.c.bf16 %v586_v4, %v586_v4 }
  0xda   : > { %v598_v7 = vunpack.c.l.b16 %v590_v5 }
  0xdc   : > { %v600_v8 = vpack.c.b16 %v598_v7, %v597_v6 }
  0xde   : > { %859 = vmatmul.bf16.gmra.mxu0 %v600_v8  ;;  %v609_v11 = vshrl.u32 %v600_v8, 16  ;;  %v612_v12 = vshll.u32 %v600_v8, 16  ;;  %v1629_v8 = vld [vmem:[%s2149_s3 + $0x38] sm:$0xff] }
  0xdf   : > { %1171 = vmatpush.bf16.msrb.mxu2 %v1629_v8 }
  0xe0   : > { %v611_v13 = vrot.slane %v609_v11, 7  ;;  %v621_v14 = vrot.slane %v612_v12, 1 }
  0xe2   : > { %v614_v15 = vor.u32 %v612_v12, %v611_v13  ;;  %v622_v16 = vor.u32 %v621_v14, %v609_v11  ;;  %v989_v11 = vld [vmem:[%s2151_s5 + $0x78] sm:$0xff]  ;;  %v988_v12 = vld [vmem:[%s2151_s5 + $0x70] sm:$0xff]  ;;  %v987_v14 = vld [vmem:[%s2151_s5 + $0x68] sm:$0xff] }
  0xe3   : > { %v1628_v13 = vld [vmem:[%s2149_s3 + $0x30] sm:$0xff]  ;;  %1217 = vmatpush.msrb.mxu3 %v989_v11 }
  0xe4   : > { %v618_v17 = vsel %vm1918_vm4, 0, %v614_v15  ;;  %v626_v18 = vsel %vm1922_vm5, %v622_v16, 0  ;;  %1172 = vmatpush.bf16.msrb.mxu2 %v1628_v13  ;;  %v1627_v15 = vld [vmem:[%s2149_s3 + $0x28] sm:$0xff]  ;;  %v986_v16 = vld [vmem:[%s2151_s5 + $0x60] sm:$0xff]  ;;  %v977_v13 = vld [vmem:[%s2151_s5 + $0x18] sm:$0xff] }
  0xe5   : > { %840 = vmatmul.bf16.gmra.mxu3 %v618_v17  ;;  %878 = vmatmul.bf16.gmra.mxu1 %v626_v18  ;;  %v1626_v17 = vld [vmem:[%s2149_s3 + $0x20] sm:$0xff]  ;;  %v985_v18 = vld [vmem:[%s2151_s5 + $0x58] sm:$0xff] }
  0xe6   : > { %1218 = vmatpush.msrb.mxu3 %v988_v12 }
  0xe8   : > { %1219 = vmatpush.msrb.mxu3 %v987_v14  ;;  %1173 = vmatpush.bf16.msrb.mxu2 %v1627_v15 }
  0xea   : > { %1220 = vmatpush.msrb.mxu3 %v986_v16 }
  0xec   : > { %1174 = vmatpush.bf16.msrb.mxu2 %v1626_v17  ;;  %1221 = vmatpush.msrb.mxu3 %v985_v18 }
 0x14b   : > { %v855_v19 = vpop.f32.mrf.mxu0 }
 0x152   : > { %v874_v21 = vpop.f32.mrf.mxu1 }
 0x153   : > { %v857_v27 = vpop.f32.mrf.mxu0 }
 0x158   : > { %v836_v22 = vpop.f32.mrf.mxu3 }
 0x159   : > { %v837_v23 = vadd.f32 %v1702_v20, %v836_v22  ;;  %v994_v22 = vrot.slane %v1905_v9, 2 }
 0x15a   : > { %v876_v29 = vpop.f32.mrf.mxu1 }
 0x15b   : > { %v856_v26 = vadd.f32 %v855_v19, %v837_v23  ;;  %v860_v36 = vpop.f32.mrf.mxu0  ;;  %v984_v19 = vld [vmem:[%s2151_s5 + $0x50] sm:$0xff]  ;;  %v1000_v23 = vrot.slane %v1911_v24, 2 }
 0x15c   : > { %1222 = vmatpush.msrb.mxu3 %v984_v19  ;;  %v976_v19 = vld [vmem:[%s2151_s5 + $0x10] sm:$0xff] }
 0x15d   : > { %v875_v28 = vadd.f32 %v874_v21, %v856_v26  ;;  %v983_v21 = vld [vmem:[%s2151_s5 + $0x48] sm:$0xff]  ;;  %v995_v26 = vrot.slane %v1905_v9, 4 }
 0x15e   : > { %1223 = vmatpush.msrb.mxu3 %v983_v21 }
 0x15f   : > { %v889_v32 = vrot.slane %v875_v28, 7  ;;  %v902_v33 = vrot.slane %v875_v28, 1 }
 0x160   : > { %v838_v30 = vpop.f32.mrf.mxu3 }
 0x161   : > { %v839_v46 = vadd.f32 %v1702_v20, %v838_v30  ;;  %v899_v38 = vsel %vm312_vm0, -inf, %v889_v32  ;;  %v1002_v30 = vrot.slane %v1911_v24, 6 }
 0x162   : > { %v879_v43 = vpop.f32.mrf.mxu1 }
 0x163   : > { %v858_v31 = vadd.f32 %v857_v27, %v839_v46  ;;  %v862_v55 = vpop.f32.mrf.mxu0  ;;  %v1001_v27 = vrot.slane %v1911_v24, 4  ;;  %v1019_v46 = vpack.c.bf16 %v994_v22, %v994_v22 }
 0x165   : > { %v877_v49 = vadd.f32 %v876_v29, %v858_v31  ;;  %v982_v29 = vld [vmem:[%s2151_s5 + $0x40] sm:$0xff]  ;;  %v2017_v31 = vpack.c.bf16 %v1000_v23, %v1000_v23 }
 0x166   : > { %1224 = vmatpush.msrb.mxu3 %v982_v29 }
 0x167   : > { %v890_v34 = vrot.slane %v877_v49, 7  ;;  %v903_v35 = vrot.slane %v877_v49, 1 }
 0x168   : > { %v841_v37 = vpop.f32.mrf.mxu3 }
 0x169   : > { %v842_v39 = vadd.f32 %v1702_v20, %v841_v37  ;;  %v891_v40 = vsel %vm312_vm0, %v889_v32, %v890_v34  ;;  %v904_v41 = vsel %vm901_vm6, %v902_v33, %v903_v35  ;;  %v912_v42 = vsel %vm901_vm6, %v903_v35, -inf  ;;  %v1624_v32 = vld [vmem:[%s2149_s3 + $0x10] sm:$0xff] }
 0x16a   : > { %v914_v44 = vmax.f32 %v899_v38, %v904_v41  ;;  %v915_v45 = vmax.f32 %v891_v40, %v912_v42  ;;  %v881_v57 = vpop.f32.mrf.mxu1  ;;  %v1003_v33 = vrot.slane %v1913_v25, 2  ;;  %v1020_v34 = vpack.c.bf16 %v995_v26, %v995_v26 }
 0x16b   : > { %v861_v50 = vadd.f32 %v860_v36, %v842_v39  ;;  %v2024_v35 = vpack.c.bf16 %v1001_v27, %v1001_v27  ;;  %v981_v36 = vld [vmem:[%s2151_s5 + $0x38] sm:$0xff]  ;;  %v998_v37 = vrot.slane %v1907_v10, 4  ;;  %v1004_v38 = vrot.slane %v1913_v25, 4 }
 0x16c   : > { %v1952_v47 = vmax.f32 %v875_v28, %v914_v44  ;;  %v1954_v48 = vmax.f32 %v877_v49, %v915_v45  ;;  %v996_v28 = vrot.slane %v1905_v9, 6  ;;  %v997_v49 = vrot.slane %v1907_v10, 2  ;;  %1225 = vmatpush.msrb.mxu3 %v981_v36  ;;  %v980_v45 = vld [vmem:[%s2151_s5 + $0x30] sm:$0xff] }
 0x16d   : > { %v880_v53 = vadd.f32 %v879_v43, %v861_v50  ;;  %v1018_v39 = vpack.c.bf16 %v1905_v9, %v1905_v9  ;;  %v999_v41 = vrot.slane %v1907_v10, 6  ;;  %v1005_v42 = vrot.slane %v1913_v25, 6 }
 0x16e   : > { %v1686_v51 = vpack.i.bf16 %v1954_v48, %v1952_v47  ;;  %v1021_v40 = vpack.c.bf16 %v996_v28, %v996_v28  ;;  %v1022_v43 = vpack.c.bf16 %v1907_v10, %v1907_v10  ;;  %v1023_v44 = vpack.c.bf16 %v997_v49, %v997_v49  ;;  %1226 = vmatpush.msrb.mxu3 %v980_v45  ;;  %v975_v28 = vld [vmem:[%s2151_s5 + $0x8] sm:$0xff] }
 0x16f   : > { %v892_v58 = vrot.slane %v880_v53, 7  ;;  %v905_v60 = vrot.slane %v880_v53, 1  ;;  %v1024_v50 = vpack.c.bf16 %v998_v37, %v998_v37  ;;  %v1029_v9 = vpack.c.bf16 %v1002_v30, %v1002_v30 }
 0x170   : > { %v843_v52 = vpop.f32.mrf.mxu3  ;;  %1687 = vrot.lane.b32.xlu0 %v1686_v51, %s1805_s10  ;;  %v1031_v10 = vpack.c.bf16 %v1003_v33, %v1003_v33 }
 0x171   : > { %v844_v54 = vadd.f32 %v1702_v20, %v843_v52  ;;  %v900_v1 = vsel %vm312_vm0, -inf, %v892_v58  ;;  %v1625_v20 = vld [vmem:[%s2149_s3 + $0x18] sm:$0xff]  ;;  %v1030_v52 = vpack.c.bf16 %v1913_v25, %v1913_v25  ;;  %v1074_v25 = vunpack.c.l.b16 %v1022_v43 }
 0x172   : > { %1175 = vmatpush.bf16.msrb.mxu2 %v1625_v20  ;;  %v1083_v11 = vunpack.c.l.b16 %v1031_v10 }
 0x173   : > { %v863_v56 = vadd.f32 %v862_v55, %v844_v54  ;;  %v1025_v54 = vpack.c.bf16 %v999_v41, %v999_v41  ;;  %v1032_v55 = vpack.c.bf16 %v1004_v38, %v1004_v38  ;;  %v1082_v8 = vunpack.c.l.b16 %v1030_v52  ;;  %v974_v38 = vld [vmem:[%s2151_s5] sm:$0xff] }
 0x174   : > { %v1095_v17 = vrot.slane %v1074_v25, 4 }
 0x175   : > { %v882_v59 = vadd.f32 %v881_v57, %v863_v56  ;;  %v1071_v56 = vunpack.c.l.b16 %v1019_v46  ;;  %v979_v57 = vld [vmem:[%s2151_s5 + $0x28] sm:$0xff]  ;;  %v1084_v20 = vunpack.c.l.b16 %v1032_v55  ;;  %v1113_v33 = vrot.slane %v1082_v8, 4 }
 0x176   : > { %1176 = vmatpush.bf16.msrb.mxu2 %v1624_v32  ;;  %1227 = vmatpush.msrb.mxu3 %v979_v57 }
 0x177   : > { %v893_v61 = vrot.slane %v882_v59, 7  ;;  %v906_v62 = vrot.slane %v882_v59, 1  ;;  %v1086_v12 = vrot.slane %v1071_v56, 7  ;;  %v1117_v37 = vrot.slane %v1084_v20, 2 }
 0x178   : > { %1692 = vrot.lane.b32.xlu0 %v1686_v51, %s1806_s11  ;;  %v1026_v51 = vpack.c.bf16 %v1911_v24, %v1911_v24  ;;  %v1072_v24 = vunpack.c.l.b16 %v1020_v34  ;;  %v1115_v34 = vrot.slane %v1083_v11, 3 }
 0x179   : > { %v894_v63 = vsel %vm312_vm0, %v892_v58, %v893_v61  ;;  %v913_v0 = vsel %vm901_vm6, %v906_v62, -inf  ;;  %v907_v2 = vsel %vm901_vm6, %v905_v60, %v906_v62  ;;  %v1033_v58 = vpack.c.bf16 %v1005_v42, %v1005_v42 }
 0x17a   : > { %v917_v3 = vmax.f32 %v894_v63, %v913_v0  ;;  %v916_v4 = vmax.f32 %v900_v1, %v907_v2  ;;  %v1073_v60 = vunpack.c.l.b16 %v1021_v40  ;;  %v1075_v61 = vunpack.c.l.b16 %v1023_v44  ;;  %v978_v0 = vld [vmem:[%s2151_s5 + $0x20] sm:$0xff] }
 0x17b   : > { %v1076_v62 = vunpack.c.l.b16 %v1024_v50  ;;  %v1077_v63 = vunpack.c.l.b16 %v1025_v54  ;;  %v1078_v1 = vunpack.c.l.b16 %v1026_v51  ;;  %v1079_v2 = vunpack.c.l.b16 %v2017_v31  ;;  %1228 = vmatpush.msrb.mxu3 %v978_v0 }
 0x17c   : > { %v1963_v5 = vmax.f32 %v882_v59, %v917_v3  ;;  %v1965_v6 = vmax.f32 %v880_v53, %v916_v4  ;;  %v1623_v53 = vld [vmem:[%s2149_s3 + $0x8] sm:$0xff]  ;;  %v1070_v59 = vunpack.c.l.b16 %v1018_v39  ;;  %v1080_v3 = vunpack.c.l.b16 %v2024_v35 }
 0x17d   : > { %1177 = vmatpush.bf16.msrb.mxu2 %v1623_v53  ;;  %v1081_v4 = vunpack.c.l.b16 %v1029_v9  ;;  %v1089_v14 = vrot.slane %v1072_v24, 6  ;;  %v1092_v15 = vrot.slane %v1073_v60, 5  ;;  %1229 = vmatpush.msrb.mxu3 %v977_v13  ;;  %v1098_v18 = vrot.slane %v1075_v61, 3 }
 0x17e   : > { %943 = vrot.lane.b32.xlu2 %v1963_v5, %s1806_s11  ;;  %v1696_v7 = vpack.i.bf16 %v1963_v5, %v1965_v6  ;;  %v1088_v16 = vsel %vm1087_vm7, %v1086_v12, %v1070_v59  ;;  %v1101_v22 = vrot.slane %v1076_v62, 2  ;;  %v1085_v23 = vunpack.c.l.b16 %v1033_v58 }
 0x17f   : > { %v1091_v21 = vsel %vm1090_vm8, %v1089_v14, %v1088_v16  ;;  %1230 = vmatpush.msrb.mxu3 %v976_v19  ;;  %v1107_v27 = vrot.slane %v1079_v2, 7  ;;  %v1104_v30 = vrot.slane %v1077_v63, 1  ;;  %v1109_v46 = vrot.slane %v1080_v3, 6 }
 0x180   : > { %1697 = vrot.lane.b32.xlu1 %v1696_v7, %s1805_s10  ;;  %v1622_v7 = vld [vmem:[%s2149_s3] sm:$0xff]  ;;  %v1094_v26 = vsel %vm1093_vm9, %v1092_v15, %v1091_v21  ;;  %v1111_v31 = vrot.slane %v1081_v4, 5  ;;  %v1119_v40 = vrot.slane %v1085_v23, 1  ;;  %v922_v9 = vlaneseq }
 0x181   : > { %1178 = vmatpush.bf16.msrb.mxu2 %v1622_v7  ;;  %v1097_v29 = vsel %vm1096_vm10, %v1095_v17, %v1094_v26  ;;  %v1108_v49 = vsel %vm1087_vm7, %v1107_v27, %v1078_v1  ;;  %1231 = vmatpush.msrb.mxu3 %v975_v28  ;;  %vm1240_vm0 = vcmask 523264  }
 0x182   : > { %v1100_v32 = vsel %vm1099_vm11, %v1098_v18, %v1097_v29  ;;  %v1110_v36 = vsel %vm1090_vm8, %v1109_v46, %v1108_v49  ;;  %v923_v52 = vand.u32 127, %v922_v9 }
 0x183   : > { %v1103_v35 = vsel %vm1102_vm12, %v1101_v22, %v1100_v32  ;;  %v1112_v39 = vsel %vm1093_vm9, %v1111_v31, %v1110_v36  ;;  %1232 = vmatpush.msrb.mxu3 %v974_v38 }
 0x184   : > { %v1114_v41 = vsel %vm1096_vm10, %v1113_v33, %v1112_v39  ;;  %v1106_v42 = vsel %vm1105_vm13, %v1104_v30, %v1103_v35  ;;  %vm932_vm14 = vcmp.ge.s32.totalorder %v923_v52, 8  ;;  %vm945_vm15 = vcmp.lt.s32.totalorder %v923_v52, 120 }
 0x185   : > { %v1116_v43 = vsel %vm1099_vm11, %v1115_v34, %v1114_v41 }
 0x186   : > { %v1118_v44 = vsel %vm1102_vm12, %v1117_v37, %v1116_v43 }
 0x187   : > { %v1120_v45 = vsel %vm1105_vm13, %v1119_v40, %v1118_v44 }
 0x188   : > { %941 = vrot.lane.b32.xlu1 %v1965_v6, %s1806_s11  ;;  %v1121_v50 = vpack.c.b16 %v1120_v45, %v1106_v42 }
 0x18a   : > { %1179 = vmatmul.bf16.vlgmr.msrb.gmra.mxu2 %v1121_v50 }
 0x1d8   : > { %v944_v13 = vpop.permute.xlu2 %943 }
 0x1d9   : > { %v949_v21 = vsel %vm945_vm15, %v944_v13, -inf }
 0x1e2   : > { %v1688_v51 = vpop.permute.xlu0 %1687 }
 0x1e3   : > { %v1690_v53 = vunpack.i.h.bf16 %v1688_v51  ;;  %v1689_v54 = vunpack.i.l.bf16 %v1688_v51 }
 0x1e5   : > { %v934_v57 = vsel %vm932_vm14, %v1690_v53, -inf  ;;  %v933_v58 = vsel %vm932_vm14, %v1689_v54, -inf }
 0x1ea   : > { %v1693_v10 = vpop.permute.xlu0 %1692 }
 0x1eb   : > { %v1695_v55 = vunpack.i.h.bf16 %v1693_v10  ;;  %v1694_v56 = vunpack.i.l.bf16 %v1693_v10 }
 0x1ed   : > { %v947_v59 = vsel %vm945_vm15, %v1695_v55, -inf  ;;  %v946_v24 = vsel %vm945_vm15, %v1694_v56, -inf  ;;  %v1703_v56 = vld [vmem:[%s2150_s4] ss:$0 sm:$0xff] }
 0x1ee   : > { %v950_v60 = vmax.f32 %v933_v58, %v946_v24  ;;  %v951_v25 = vmax.f32 %v934_v57, %v947_v59 }
 0x1f0   : > { %v954_v61 = vmax.f32 %v1952_v47, %v950_v60  ;;  %v955_v62 = vmax.f32 %v1954_v48, %v951_v25 }
 0x1f2   : > { %v962_v63 = vrot.slane %v954_v61, 2  ;;  %v963_v0 = vrot.slane %v954_v61, 4  ;;  %v964_v1 = vrot.slane %v954_v61, 6  ;;  %v1698_v2 = vpop.permute.xlu1 %1697  ;;  %v1185_v4 = vperm.slane %v954_v61, 0 }
 0x1f3   : > { %v1700_v3 = vunpack.i.h.bf16 %v1698_v2  ;;  %v965_v11 = vrot.slane %v955_v62, 2  ;;  %v966_v12 = vrot.slane %v955_v62, 4  ;;  %v967_v15 = vrot.slane %v955_v62, 6 }
 0x1f4   : > { %v1186_v7 = vperm.slane %v962_v63, 0  ;;  %v1187_v8 = vperm.slane %v963_v0, 0  ;;  %v1188_v14 = vperm.slane %v964_v1, 0  ;;  %v1699_v47 = vunpack.i.l.bf16 %v1698_v2 }
 0x1f5   : > { %v936_v17 = vsel %vm932_vm14, %v1700_v3, -inf  ;;  %v1189_v18 = vperm.slane %v955_v62, 0  ;;  %v1190_v19 = vperm.slane %v965_v11, 0  ;;  %v1191_v22 = vperm.slane %v966_v12, 0 }
 0x1f6   : > { %v1201_v16 = vsel %vm1087_vm7, %v1186_v7, %v1185_v4  ;;  %v953_v26 = vmax.f32 %v936_v17, %v949_v21  ;;  %v1192_v28 = vperm.slane %v967_v15, 0  ;;  %v935_v30 = vsel %vm932_vm14, %v1699_v47, -inf }
 0x1f7   : > { %v1202_v48 = vsel %vm1090_vm8, %v1187_v8, %v1201_v16 }
 0x1f8   : > { %v1203_v20 = vsel %vm1093_vm9, %v1188_v14, %v1202_v48  ;;  %v957_v33 = vmax.f32 %v1963_v5, %v953_v26 }
 0x1f9   : > { %v1204_v23 = vsel %vm1096_vm10, %v1189_v18, %v1203_v20 }
 0x1fa   : > { %v942_v27 = vpop.permute.xlu1 %941  ;;  %v1205_v29 = vsel %vm1099_vm11, %v1190_v19, %v1204_v23  ;;  %v971_v41 = vrot.slane %v957_v33, 2  ;;  %v972_v42 = vrot.slane %v957_v33, 4  ;;  %v973_v44 = vrot.slane %v957_v33, 6 }
 0x1fb   : > { %v948_v46 = vsel %vm945_vm15, %v942_v27, -inf  ;;  %v1206_v31 = vsel %vm1102_vm12, %v1191_v22, %v1205_v29  ;;  %v1197_v50 = vperm.slane %v957_v33, 0 }
 0x1fc   : > { %v952_v32 = vmax.f32 %v935_v30, %v948_v46  ;;  %v1207_v49 = vsel %vm1105_vm13, %v1192_v28, %v1206_v31  ;;  %v1198_v9 = vperm.slane %v971_v41, 0  ;;  %v1200_v53 = vperm.slane %v973_v44, 0 }
 0x1fd   : > { %1233 = vmatmul.f32.vlgmr.msrb.gmra.mxu3 %v1207_v49 }
 0x1fe   : > { %v956_v34 = vmax.f32 %v1965_v6, %v952_v32  ;;  %v1199_v6 = vperm.slane %v972_v42, 0 }
 0x200   : > { %v968_v35 = vrot.slane %v956_v34, 2  ;;  %v969_v36 = vrot.slane %v956_v34, 4  ;;  %v970_v37 = vrot.slane %v956_v34, 6  ;;  %v1193_v38 = vperm.slane %v956_v34, 0 }
 0x202   : > { %v1194_v39 = vperm.slane %v968_v35, 0  ;;  %v1195_v40 = vperm.slane %v969_v36, 0  ;;  %v1196_v43 = vperm.slane %v970_v37, 0 }
 0x204   : > { %v1208_v45 = vsel %vm1087_vm7, %v1194_v39, %v1193_v38 }
 0x205   : > { %v1209_v51 = vsel %vm1090_vm8, %v1195_v40, %v1208_v45 }
 0x206   : > { %v1210_v5 = vsel %vm1093_vm9, %v1196_v43, %v1209_v51 }
 0x207   : > { %v1211_v52 = vsel %vm1096_vm10, %v1197_v50, %v1210_v5 }
 0x208   : > { %v1212_v54 = vsel %vm1099_vm11, %v1198_v9, %v1211_v52 }
 0x209   : > { %v1213_v10 = vsel %vm1102_vm12, %v1199_v6, %v1212_v54 }
 0x20a   : > { %v1214_v55 = vsel %vm1105_vm13, %v1200_v53, %v1213_v10 }
 0x20b   : > { %1236 = vmatmul.f32.gmra.mxu3 %v1214_v55 }
 0x20d   : > { %v1180_v57 = vpop.f32.mrf.mxu2 }
 0x20e   : > { %v1181_v58 = vadd.f32 %v1703_v56, %v1180_v57 }
 0x215   : > { %v1182_v60 = vpop.f32.mrf.mxu2 }
 0x216   : > { %v1183_v25 = vadd.f32 %v1703_v56, %v1182_v60 }
 0x280   : > { %v1234_v59 = vpop.f32.mrf.mxu3 }
 0x281   : > { %v1235_v24 = vadd.f32 %v1234_v59, %v1181_v58 }
 0x283   : > { %1241 = vst.msk [vmem:[%s264_s28] sm:$0xff] %vm1240_vm0, %v1235_v24 }
 0x28e   : > { %v1237_v61 = vpop.f32.mrf.mxu3 }
 0x28f   : > { %v1238_v62 = vadd.f32 %v1237_v61, %v1183_v25 }
 0x291   : > { %1242 = vst.msk [vmem:[%s264_s28 + $0x8] sm:$0xff] %vm1240_vm0, %v1238_v62 }
 0x292   : > { %1761 = shalt.err (!%p1758_p8)
}
 0x293   : > { %s1807_s20 = smov 128  }
 0x294   : > { %1635 = dma.vmem_to_hbm [thread:$0]  (%p1881_p5), %s1257_s13, 256, %s1259_s14, %s1244_s15, %s1807_s20, %s1807_s20, %s1805_s10  }
 0x295 PF: > { %p1647_p9 = scmp.ge.s32.totalorder %s1800_s24, 2  ;;  %s1273_s28 = sand.u32 1, %s1788_s21  }
 0x296   : > { %s1274_s9 = scalar_lea.sflag [#allocation4], %s1273_s28 }
 0x297   : > { %p1642_p10 = pnand %p1647_p9, %p1885_p6 }
 0x299   : > { %p1643_p11 = pneg %p1642_p10 }
 0x29b   : > { %1783 = dma.done.wait (%p1643_p11), %s1274_s9, 256  }
 0x29c   : > { %1785 = vsyncadd (%p1643_p11), %s1274_s9, 4294967040  ;;  %p17_p12 = scmp.ge.s32.totalorder %s1868_s27, 4   ;;  %s2159_s21 = smov %s1792_s22 }
 0x29d   : > { %s2160_s22 = smov %s1796_s23  ;;  %s2161_s23 = smov %s1879_s30 }
 0x29e   : > { %s2162_s24 = smov %s1868_s27  ;;  %19 = sbr.rel (!%p17_p12) target bundleno = 4 (0x4), region = 86 }
 0x2a3   :  { %1280 = vsyncpa [#allocation3], 1 }
 0x2a4   :  { %1282 = vsyncpa [#allocation3 + $0x1], 1 }
 0x2a5   :  { %1283 = vsyncpa [#allocation4], 1 }
 0x2a6   :  { %1285 = vsyncpa [#allocation4 + $0x1], 1 }

</bundles_post_ra>
